<compile_context>
chip_gen: v5e
topology: v5e:2x2
jax: 0.10.0
libtpu: 0.0.40
codegen_flags: <defaults>
</compile_context>

<pallas_src>
import jax
import jax.numpy as jnp
from jax.experimental import pallas as pl
from jax.experimental.pallas import tpu as pltpu

BN_EPS = 1e-5


def mlp_layer_kernel(x_ref, w_ref, gamma_ref, beta_ref, o_ref):
    """One grid step: accumulate a K-slab of the matmul; BN+SiLU on last K."""
    k = pl.program_id(1)

    @pl.when(k == 0)
    def _init():
        o_ref[...] = jnp.zeros_like(o_ref)

    # Partial matmul on the MXU: (N, tk)[bf16] x (tn, tk)[bf16]^T -> (N, tn) f32.
    # Weight is in PyTorch (Dout, Din) layout; contract dim 1 with dim 1.
    o_ref[...] += jax.lax.dot_general(
        x_ref[...], w_ref[...],
        dimension_numbers=(((1,), (1,)), ((), ())),
        preferred_element_type=jnp.float32)

    @pl.when(k == pl.num_programs(1) - 1)
    def _finalize():
        y = o_ref[...]                                    # (N, tn) f32
        inv_n = 1.0 / y.shape[0]
        # Two-pass batch stats (training-mode BatchNorm1d, biased variance).
        mean = jnp.sum(y, axis=0, keepdims=True) * inv_n
        centered = y - mean
        var = jnp.sum(centered * centered, axis=0, keepdims=True) * inv_n
        # Fold gamma into the normalization scale (single (N, tn) mul + add).
        scale = gamma_ref[...] * jax.lax.rsqrt(var + BN_EPS)     # (1, tn)
        y_bn = centered * scale + beta_ref[...]
        # SiLU
        o_ref[...] = y_bn * jax.nn.sigmoid(y_bn)


def _pick_tile(dim, candidates=(256, 128)):
    for c in candidates:
        if dim % c == 0:
            return c
    return dim  # small / odd dims: take the whole axis in one block


def mlp_layer_pallas(x, w, b, gamma, beta):
    """x: (N, Din) f32; w: (Dout, Din) (PyTorch layout); b/gamma/beta: (Dout,).

    `b` (the nn.Linear bias) is accepted for interface parity but intentionally
    unused: training-mode BatchNorm subtracts the batch mean, which cancels the
    per-feature bias exactly (variance is shift-invariant), so dropping it is
    mathematically exact.
    """
    del b  # exactly cancelled by the batch-mean subtraction
    n, d_in = x.shape
    d_out = w.shape[0]

    tn = _pick_tile(d_out)   # output-feature (lane) tile
    tk = _pick_tile(d_in)    # contraction tile
    grid = (d_out // tn, d_in // tk)

    # bf16 MXU operands (f32 accumulation inside the kernel); f32 BN params.
    xb = x.astype(jnp.bfloat16)
    wb = w.astype(jnp.bfloat16)
    g2 = gamma.reshape(1, d_out).astype(jnp.float32)
    be2 = beta.reshape(1, d_out).astype(jnp.float32)

    cost = pl.CostEstimate(
        flops=2 * n * d_in * d_out,
        transcendentals=n * d_out,                      # sigmoid
        bytes_accessed=(grid[0] * n * d_in * 2          # x re-read per Dout tile
                        + d_out * d_in * 2              # weights once (bf16)
                        + 2 * d_out * 4                 # gamma/beta
                        + n * d_out * 4))               # output

    # VMEM budget: double-buffered bf16 input tiles + resident f32 accumulator
    # block + small BN-param blocks, with generous margin; capped well under
    # the v7x 64 MiB physical VMEM.
    est = (2 * n * tk * 2          # x tile (double buffered, bf16)
           + 2 * tn * tk * 2       # w tile (double buffered, bf16)
           + 2 * n * tn * 4        # output/accumulator block (+ spare)
           + 4 * 8 * tn * 4)       # gamma/beta blocks (sublane padded)
    vmem_limit = min(max(4 * est, 8 << 20), 48 << 20)

    return pl.pallas_call(
        mlp_layer_kernel,
        out_shape=jax.ShapeDtypeStruct((n, d_out), jnp.float32),
        grid_spec=pltpu.PrefetchScalarGridSpec(
            num_scalar_prefetch=0,
            grid=grid,                                   # (Dout tiles, Din tiles)
            in_specs=[
                pl.BlockSpec((n, tk), lambda j, k: (0, k)),    # x: full batch, K slab
                pl.BlockSpec((tn, tk), lambda j, k: (j, k)),   # w: (Dout, Din) layout
                pl.BlockSpec((1, tn), lambda j, k: (0, j)),    # gamma
                pl.BlockSpec((1, tn), lambda j, k: (0, j)),    # beta
            ],
            out_specs=pl.BlockSpec((n, tn), lambda j, k: (0, j)),  # resident over k
        ),
        compiler_params=pltpu.CompilerParams(
            dimension_semantics=("parallel", "arbitrary"),
            vmem_limit_bytes=vmem_limit),
        cost_estimate=cost,
    )(xb, wb, g2, be2)


def mlp_layer_ref(x, w, b, gamma, beta):
    """Pure-JAX f32 reference matching PyTorch MLPLayer forward (train-mode BN)."""
    y = x @ w.T + b
    mean = jnp.mean(y, axis=0, keepdims=True)
    var = jnp.mean((y - mean) ** 2, axis=0, keepdims=True)
    y_bn = (y - mean) * jax.lax.rsqrt(var + BN_EPS) * gamma + beta
    return y_bn * jax.nn.sigmoid(y_bn)


if __name__ == "__main__":
    # Small shapes consistent with MLPLayer(in_features=768, out_features=384).
    # Dout is a multiple of 128 (lane-dense stores); the grid is (3, 3), which
    # exercises both the K accumulation and the parallel Dout axis.
    N, D_IN, D_OUT = 32, 768, 384

    key = jax.random.PRNGKey(0)
    kx, kw, kb, kg, kbe = jax.random.split(key, 5)

    x = jax.random.normal(kx, (N, D_IN), dtype=jnp.float32)

    bound = 1.0 / jnp.sqrt(jnp.float32(D_IN))
    w = jax.random.uniform(kw, (D_OUT, D_IN), jnp.float32, -bound, bound)
    b = jax.random.uniform(kb, (D_OUT,), jnp.float32, -bound, bound)
    # Non-default affine params so the gamma/beta path is actually exercised.
    gamma = 1.0 + 0.1 * jax.random.normal(kg, (D_OUT,), jnp.float32)
    beta = 0.1 * jax.random.normal(kbe, (D_OUT,), jnp.float32)

    out = mlp_layer_pallas(x, w, b, gamma, beta)
    out = jax.block_until_ready(out)

    ref = mlp_layer_ref(x, w, b, gamma, beta)
    assert out.shape == (N, D_OUT)
    # bf16 MXU inputs (f32 accumulation) -> relaxed tolerance vs. pure-f32 ref.
    assert jnp.allclose(out, ref, atol=3e-2, rtol=3e-2), (
        "mismatch vs reference; max abs diff = %e" % float(jnp.max(jnp.abs(out - ref))))

    print("KERNEL_OK")
</pallas_src>

<mosaic_0001>
module attributes {stable_mosaic.version = 11 : i64} {
  func.func @mlp_layer_kernel(%arg0: i32, %arg1: i32, %arg2: memref<32x256xbf16, #tpu.memory_space<vmem>>, %arg3: memref<128x256xbf16, #tpu.memory_space<vmem>>, %arg4: memref<1x128xf32, #tpu.memory_space<vmem>>, %arg5: memref<1x128xf32, #tpu.memory_space<vmem>>, %arg6: memref<32x128xf32, #tpu.memory_space<vmem>>) attributes {dimension_semantics = [#tpu.dimension_semantics<parallel>, #tpu.dimension_semantics<arbitrary>], iteration_bounds = array<i64: 3, 3>, scalar_prefetch = 0 : i64, scratch_operands = 0 : i64, tpu.core_type = #tpu.core_type<tc>, window_params = [{transform_indices = @transform_0, window_bounds = array<i64: 32, 256>}, {transform_indices = @transform_1, window_bounds = array<i64: 128, 256>}, {transform_indices = @transform_2, window_bounds = array<i64: 1, 128>}, {transform_indices = @transform_3, window_bounds = array<i64: 1, 128>}, {transform_indices = @transform_4, window_bounds = array<i64: 32, 128>}]} {
    %c0_i32 = arith.constant 0 : i32
    %0 = arith.cmpi eq, %arg1, %c0_i32 : i32
    %1 = arith.extui %0 : i1 to i32
    %c0_i32_0 = arith.constant 0 : i32
    %2 = arith.cmpi ne, %1, %c0_i32_0 : i32
    scf.if %2 {
      %cst_9 = arith.constant 0.000000e+00 : f32
      %12 = vector.broadcast %cst_9 : f32 to vector<32x128xf32>
      %c0_10 = arith.constant 0 : index
      %c0_11 = arith.constant 0 : index
      %13 = vector.load %arg6[%c0_10, %c0_11] : memref<32x128xf32, #tpu.memory_space<vmem>>, vector<32x128xf32>
      tpu.vector_store %arg6[%c0_10, %c0_11], %12 {strides = array<i32>} : memref<32x128xf32, #tpu.memory_space<vmem>>, vector<32x128xf32>,
    } else {
    }
    %c0 = arith.constant 0 : index
    %c0_1 = arith.constant 0 : index
    %3 = vector.load %arg6[%c0, %c0_1] : memref<32x128xf32, #tpu.memory_space<vmem>>, vector<32x128xf32>
    %c0_2 = arith.constant 0 : index
    %c0_3 = arith.constant 0 : index
    %4 = vector.load %arg2[%c0_2, %c0_3] : memref<32x256xbf16, #tpu.memory_space<vmem>>, vector<32x256xbf16>
    %c0_4 = arith.constant 0 : index
    %c0_5 = arith.constant 0 : index
    %5 = vector.load %arg3[%c0_4, %c0_5] : memref<128x256xbf16, #tpu.memory_space<vmem>>, vector<128x256xbf16>
    %cst = arith.constant dense<0.000000e+00> : vector<32x128xf32>
    %6 = tpu.matmul %4, %5, %cst {dimension_numbers = #tpu.dot_dimension_numbers<[1], [1], [0], [0], [0, 0, 1, 0], [], []>} : vector<32x256xbf16>, vector<128x256xbf16>, vector<32x128xf32> -> vector<32x128xf32>
    %7 = arith.addf %3, %6 : vector<32x128xf32>
    %c0_6 = arith.constant 0 : index
    %c0_7 = arith.constant 0 : index
    %8 = vector.load %arg6[%c0_6, %c0_7] : memref<32x128xf32, #tpu.memory_space<vmem>>, vector<32x128xf32>
    tpu.vector_store %arg6[%c0_6, %c0_7], %7 {strides = array<i32>} : memref<32x128xf32, #tpu.memory_space<vmem>>, vector<32x128xf32>,
    %c2_i32 = arith.constant 2 : i32
    %9 = arith.cmpi eq, %arg1, %c2_i32 : i32
    %10 = arith.extui %9 : i1 to i32
    %c0_i32_8 = arith.constant 0 : i32
    %11 = arith.cmpi ne, %10, %c0_i32_8 : i32
    scf.if %11 {
      %c0_9 = arith.constant 0 : index
      %c0_10 = arith.constant 0 : index
      %12 = vector.load %arg6[%c0_9, %c0_10] : memref<32x128xf32, #tpu.memory_space<vmem>>, vector<32x128xf32>
      %cst_11 = arith.constant dense<0.000000e+00> : vector<128xf32>
      %13 = vector.multi_reduction <add>, %12, %cst_11 [0] : vector<32x128xf32> to vector<128xf32>
      %14 = vector.shape_cast %13 : vector<128xf32> to vector<1x128xf32>
      %cst_12 = arith.constant 3.125000e-02 : f32
      %15 = vector.broadcast %cst_12 : f32 to vector<1x128xf32>
      %16 = arith.mulf %14, %15 : vector<1x128xf32>
      %17 = vector.broadcast %16 : vector<1x128xf32> to vector<32x128xf32>
      %18 = arith.subf %12, %17 : vector<32x128xf32>
      %19 = arith.mulf %18, %18 : vector<32x128xf32>
      %cst_13 = arith.constant dense<0.000000e+00> : vector<128xf32>
      %20 = vector.multi_reduction <add>, %19, %cst_13 [0] : vector<32x128xf32> to vector<128xf32>
      %21 = vector.shape_cast %20 : vector<128xf32> to vector<1x128xf32>
      %cst_14 = arith.constant 3.125000e-02 : f32
      %22 = vector.broadcast %cst_14 : f32 to vector<1x128xf32>
      %23 = arith.mulf %21, %22 : vector<1x128xf32>
      %c0_15 = arith.constant 0 : index
      %c0_16 = arith.constant 0 : index
      %24 = vector.load %arg4[%c0_15, %c0_16] : memref<1x128xf32, #tpu.memory_space<vmem>>, vector<1x128xf32>
      %cst_17 = arith.constant 9.99999974E-6 : f32
      %25 = vector.broadcast %cst_17 : f32 to vector<1x128xf32>
      %26 = arith.addf %23, %25 : vector<1x128xf32>
      %27 = math.rsqrt %26 : vector<1x128xf32>
      %28 = arith.mulf %24, %27 : vector<1x128xf32>
      %29 = vector.broadcast %28 : vector<1x128xf32> to vector<32x128xf32>
      %30 = arith.mulf %18, %29 : vector<32x128xf32>
      %c0_18 = arith.constant 0 : index
      %c0_19 = arith.constant 0 : index
      %31 = vector.load %arg5[%c0_18, %c0_19] : memref<1x128xf32, #tpu.memory_space<vmem>>, vector<1x128xf32>
      %32 = vector.broadcast %31 : vector<1x128xf32> to vector<32x128xf32>
      %33 = arith.addf %30, %32 : vector<32x128xf32>
      %34 = arith.negf %33 : vector<32x128xf32>
      %35 = math.exp %34 : vector<32x128xf32>
      %cst_20 = arith.constant 1.000000e+00 : f32
      %36 = vector.broadcast %cst_20 : f32 to vector<32x128xf32>
      %37 = arith.addf %36, %35 : vector<32x128xf32>
      %38 = arith.divf %36, %37 : vector<32x128xf32>
      %39 = arith.mulf %33, %38 : vector<32x128xf32>
      %c0_21 = arith.constant 0 : index
      %c0_22 = arith.constant 0 : index
      %40 = vector.load %arg6[%c0_21, %c0_22] : memref<32x128xf32, #tpu.memory_space<vmem>>, vector<32x128xf32>
      tpu.vector_store %arg6[%c0_21, %c0_22], %39 {strides = array<i32>} : memref<32x128xf32, #tpu.memory_space<vmem>>, vector<32x128xf32>,
    } else {
    }
    return
  }
  func.func @transform_0(%arg0: i32, %arg1: i32) -> (i32, i32) {
    %c0_i32 = arith.constant 0 : i32
    %c0_i32_0 = arith.constant 0 : i32
    return %c0_i32, %arg1 : i32, i32
  }
  func.func @transform_1(%arg0: i32, %arg1: i32) -> (i32, i32) {
    %c0_i32 = arith.constant 0 : i32
    return %arg0, %arg1 : i32, i32
  }
  func.func @transform_2(%arg0: i32, %arg1: i32) -> (i32, i32) {
    %c0_i32 = arith.constant 0 : i32
    %c0_i32_0 = arith.constant 0 : i32
    return %c0_i32, %arg0 : i32, i32
  }
  func.func @transform_3(%arg0: i32, %arg1: i32) -> (i32, i32) {
    %c0_i32 = arith.constant 0 : i32
    %c0_i32_0 = arith.constant 0 : i32
    return %c0_i32, %arg0 : i32, i32
  }
  func.func @transform_4(%arg0: i32, %arg1: i32) -> (i32, i32) {
    %c0_i32 = arith.constant 0 : i32
    %c0_i32_0 = arith.constant 0 : i32
    return %c0_i32, %arg0 : i32, i32
  }
}

</mosaic_0001>

<bundles_post_ra>
// kernel: tpu_custom_call.1
= control target key start
LH: loop header
LB: loop body
LE: loop exit
PB: predicated region body
PF: predicated region fallthrough
CT: control target
= control target key end

     0   :  { %s1878_s0 = inlined_call_operand.hbm [shape: bf16[32,768], index: 0, kind: input, shape index: {}]   ;;  %s1879_s1 = inlined_call_operand.hbm [shape: bf16[384,768], index: 1, kind: input, shape index: {}]   ;;  %s1880_s2 = inlined_call_operand.hbm [shape: f32[1,384], index: 2, kind: input, shape index: {}]   ;;  %s1881_s3 = inlined_call_operand.hbm [shape: f32[1,384], index: 3, kind: input, shape index: {}]   ;;  %s1882_s4 = inlined_call_operand.hbm [shape: f32[32,384], index: 4, kind: output, shape index: {}]  }
   0x1   :  { %1889 = sst [smem:[#allocation26_spill]] %s1878_s0 }
   0x2   :  { %1890 = sst [smem:[#allocation27_spill]] %s1879_s1 }
   0x3   :  { %1891 = sst [smem:[#allocation28_spill]] %s1882_s4 }
   0x4   :  { %9 = vsyncpa [#allocation3], 0 }
   0x5   :  { %11 = vsyncpa [#allocation3 + $0x1], 0 }
   0x6   :  { %12 = vsyncpa [#allocation6], 0 }
   0x7   :  { %14 = vsyncpa [#allocation6 + $0x1], 0 }
   0x8   :  { %15 = vsyncpa [#allocation9], 0 }
   0x9   :  { %17 = vsyncpa [#allocation9 + $0x1], 0 }
   0xa   :  { %18 = vsyncpa [#allocation4], 0 }
   0xb   :  { %20 = vsyncpa [#allocation4 + $0x1], 0  ;;  %s1456_s15 = smov 0   ;;  %s1458_s16 = smov 0  }
   0xc   :  { %s1460_s17 = smov 0   ;;  %s1462_s18 = smov 0  }
   0xd   :  { %s1464_s19 = smov 0   ;;  %s1466_s20 = smov 0  }
   0xe   :  { %s1468_s21 = smov 0   ;;  %s1470_s22 = smov 0  }
   0xf   :  { %s1472_s23 = smov 0   ;;  %s1474_s24 = smov 0  }
  0x10   :  { %s1476_s25 = smov 0   ;;  %s1478_s26 = smov 0  }
  0x11   :  { %s1480_s27 = smov 0   ;;  %s1482_s28 = smov 0  }
  0x12 LB: > { %1892 = sst [smem:[#allocation16_spill]] %s1390_s20  ;;  %s35_s29 = sadd.s32 1, %s1414_s26  ;;  %s1422_s28 = sphi %s1482_s28, %s26_s28   ;;  %s1418_s27 = sphi %s1480_s27, %s1944_s27   ;;  %s1414_s26 = sphi %s1478_s26, %s1933_s26   ;;  %s1410_s25 = sphi %s1476_s25, %s1943_s25   ;;  %s1406_s24 = sphi %s1474_s24, %s1932_s24   ;;  %s1402_s23 = sphi %s1472_s23, %s1931_s23   ;;  %s1398_s22 = sphi %s1470_s22, %s1942_s22   ;;  %s1394_s21 = sphi %s1468_s21, %s1941_s21   ;;  %s1390_s20 = sphi %s1466_s20, %s1929_s20   ;;  %s1386_s19 = sphi %s1464_s19, %s1940_s19   ;;  %s1382_s18 = sphi %s1462_s18, %s1939_s18   ;;  %s1378_s17 = sphi %s1460_s17, %s1938_s17   ;;  %s1374_s16 = sphi %s1458_s16, %s1937_s16   ;;  %s1370_s15 = sphi %s1456_s15, %s1936_s15  }
  0x13   : > { %1893 = sst [smem:[#allocation17_spill]] %s1402_s23  ;;  %s38_s30 = sadd.s32 1, %s1418_s27 }
  0x14   : > { %1894 = sst [smem:[#allocation18_spill]] %s1406_s24  ;;  %p36_p0 = scmp.ge.s32.totalorder %s35_s29, 3 }
  0x15   : > { %1895 = sst [smem:[#allocation19_spill]] %s1410_s25  ;;  %p53_p1 = scmp.eq.s32.totalorder %s1422_s28, 0 }
  0x16   : > { %1896 = sst [smem:[#allocation20_spill]] %s1414_s26  ;;  %s73_s5 = sadd.s32 1, %s1390_s20 }
  0x17   : > { %p80_p2 = scmp.ne.s32.totalorder %s1390_s20, %s1386_s19  ;;  %s1946_s29 = smov (%p36_p0, %s35_s29), 0 }
  0x18   : > { %1897 = sst [smem:[#allocation21_spill]] %s1946_s29  ;;  %s1948_s30 = smov (!%p36_p0, %s38_s30), %s1418_s27 }
  0x19   : > { %s1537_s6 = ssub.s32 %s1414_s26, %s1946_s29  ;;  %p1541_p3 = por %p80_p2, %p53_p1 }
  0x1a   : > { %p40_p4 = scmp.ge.s32.totalorder %s1948_s30, 3  ;;  %p43_p5 = scmp.eq.s32.totalorder %s1537_s6, 0 }
  0x1b   : > { %p86_p6 = scmp.ne.s32.totalorder %s1386_s19, %s1382_s18  ;;  %p1004_p7 = scmp.lt.s32.totalorder %s1422_s28, 9 }
  0x1c   : > { %s1950_s30 = smov (%p40_p4, %s1948_s30), 0  ;;  %s210_s10 = sand.u32 1, %s1422_s28  }
  0x1d   : > { %1899 = sst [smem:[#allocation22_spill]] %s1950_s30  ;;  %s1553_s8 = ssub.s32 %s1418_s27, %s1950_s30 }
  0x1e   : > { %s70_s9 = sor.u32 %s1553_s8, %s1537_s6  ;;  %s212_s11 = sand.u32 1, %s1390_s20  }
  0x1f   : > { %p71_p8 = scmp.eq.s32.totalorder %s70_s9, 0  ;;  %s840_s13 = sshll.u32 %s212_s11, 7 }
  0x20   : > { %s842_s14 = sshll.u32 %s1414_s26, 1  ;;  %s976_s29 = smul.u32 96, %s1418_s27 }
  0x21   : > { %s1560_s12 = scalar_select %p71_p8, %s1390_s20, %s73_s5  }
  0x22   : > { %s214_s4 = scalar_lea.vmem [#allocation5], %s840_s13  ;;  %p991_p9 = pnand %p1004_p7, %p1541_p3 }
  0x23   : > { %1900 = sst [smem:[#allocation23_spill]] %s1560_s12  ;;  %s225_s25 = sshll.u32 %s214_s4, 4  ;;  %s226_s25 = int_to_ptr.vmem [resolvable:$true] %s225_s25 }
  0x24   : > { %s220_s30 = sadd.s32 %s976_s29, %s842_s14  ;;  %s1901_s1 = sld [smem:[#allocation27_spill]] }
  0x25   : > { %s844_s9 = sshll.u32 %s220_s30, 2  ;;  %p845_p10 = scmp.ge.s32.totalorder %s1422_s28, 1 }
  0x26   : > { %p267_p11 = scmp.lt.s32.totalorder %s1422_s28, 10  ;;  %s1573_s7 = scalar_lea.sflag [#allocation6], %s210_s10 }
  0x27   : > { %s1424_s29 = smov 384   ;;  %s1425_s13 = smov 128  }
  0x28   : > { %s1426_s14 = smov 8   ;;  %p1576_p12 = pnand %p845_p10, %p267_p11 }
  0x29   : > { %s45_s24 = sadd.s32 1, %s1402_s23  ;;  %p52_p13 = scmp.ne.s32.totalorder %s1402_s23, %s1398_s22 }
  0x2a   : > { %s222_s11 = scalar_lea.hbm %s1901_s1, %s844_s9  ;;  %p58_p2 = scmp.ne.s32.totalorder %s1398_s22, %s1394_s21 }
  0x2b   : > { %s223_s4 = sshll.u32 %s222_s11, 4  ;;  %p54_p0 = por %p53_p1, %p52_p13  ;;  %s224_s4 = int_to_ptr.hbm [resolvable:$true] %s223_s4 }
  0x2c   : > { %993 = dma.hbm_to_vmem [thread:$0]  (!%p991_p9), %s224_s4, 2048, %s226_s25, %s1573_s7, %s1424_s29, %s1425_s13, %s1426_s14  }
  0x2d   : > { %s1586_s9 = scalar_select %p43_p5, %s1402_s23, %s45_s24  }
  0x2e   : > { %s188_s10 = sand.u32 1, %s1402_s23   ;;  %s939_s5 = sshll.u32 %s1414_s26, 3 }
  0x2f   : > { %1903 = sst [smem:[#allocation24_spill]] %s1586_s9  ;;  %s837_s25 = sshll.u32 %s188_s10, 5 }
  0x30   : > { %s1904_s0 = sld [smem:[#allocation26_spill]]  ;;  %s192_s1 = scalar_lea.vmem [#allocation2], %s837_s25 }
  0x31   : > { %s200_s9 = sshll.u32 %s192_s1, 4  ;;  %p988_p3 = pnand %p1004_p7, %p54_p0  ;;  %s201_s9 = int_to_ptr.vmem [resolvable:$true] %s200_s9 }
  0x32   : > { %s189_s26 = scalar_lea.sflag [#allocation3], %s188_s10  ;;  %s1600_s11 = sadd.s32 4294967295, %s1422_s28  }
  0x33   : > { %p59_p4 = scmp.eq.s32.totalorder %s1600_s11, 0  ;;  %p97_p5 = scmp.eq.s32.totalorder %s1553_s8, 0 }
  0x34   : > { %s99_s25 = sadd.s32 1, %s1378_s17  ;;  %p106_p8 = scmp.ne.s32.totalorder %s1378_s17, %s1374_s16 }
  0x35   : > { %p1611_p9 = por %p59_p4, %p58_p2  ;;  %p1618_p10 = por %p86_p6, %p59_p4 }
  0x36   : > { %s197_s6 = scalar_lea.hbm %s1904_s0, %s939_s5  ;;  %s834_s5 = sadd.s32 4294967294, %s1422_s28  }
  0x37   : > { %s198_s24 = sshll.u32 %s197_s6, 4  ;;  %p1627_p11 = por %p106_p8, %p53_p1  ;;  %s199_s24 = int_to_ptr.hbm [resolvable:$true] %s198_s24 }
  0x38   : > { %990 = dma.hbm_to_vmem [thread:$0]  (!%p988_p3), %s199_s24, 512, %s201_s9, %s189_s26, %s1424_s29, %s1425_s13, %s1426_s14  }
  0x39   : > { %s1623_s26 = scalar_select %p97_p5, %s1378_s17, %s99_s25  }
  0x3a   : > { %p112_p13 = scmp.ne.s32.totalorder %s1374_s16, %s1370_s15  ;;  %p162_p0 = scmp.eq.s32.totalorder %s1600_s11, 8 }
  0x3b   : > { %1907 = sst [smem:[#allocation25_spill]] %s1623_s26  ;;  %p168_p2 = scmp.eq.s32.totalorder %s834_s5, 8 }
  0x3c   : > { %p1634_p3 = por %p112_p13, %p59_p4  ;;  %s237_s21 = sand.u32 1, %s1378_s17  }
  0x3d   : > { %p1639_p6 = por %p162_p0, %p106_p8  ;;  %p1643_p5 = por %p168_p2, %p112_p13 }
  0x3e   : > { %s241_s4 = scalar_lea.hbm %s1880_s2, %s1418_s27  ;;  %s238_s24 = scalar_lea.vmem [#allocation7], %s237_s21 }
  0x3f   : > { %s243_s6 = sshll.u32 %s241_s4, 4  ;;  %s245_s5 = sshll.u32 %s238_s24, 4  ;;  %s244_s6 = int_to_ptr.hbm [resolvable:$true] %s243_s6  ;;  %s246_s5 = int_to_ptr.vmem [resolvable:$true] %s245_s5 }
  0x40   : > { %p994_p1 = pnand %p1004_p7, %p1627_p11  ;;  %s258_s23 = scalar_lea.hbm %s1881_s3, %s1418_s27 }
  0x41   : > { %s260_s12 = sshll.u32 %s258_s23, 4  ;;  %s255_s20 = scalar_lea.vmem [#allocation8], %s237_s21  ;;  %s261_s12 = int_to_ptr.hbm [resolvable:$true] %s260_s12 }
  0x42   : > { %996 = dma.hbm_to_vmem [thread:$0]  (!%p994_p1), %s244_s6, 16, %s246_s5, %s1573_s7  }
  0x43   : > { %s262_s26 = sshll.u32 %s255_s20, 4  ;;  %s253_s14 = scalar_lea.sflag [#allocation9], %s237_s21  ;;  %s263_s26 = int_to_ptr.vmem [resolvable:$true] %s262_s26 }
  0x44   : > { %999 = dma.hbm_to_vmem [thread:$0]  (!%p994_p1), %s261_s12, 16, %s263_s26, %s253_s14  }
  0x45   : > { %271 = sbr.rel (%p1576_p12) target bundleno = 446 (0x1be), region = 36  ;;  %s273_s29 = sand.u32 (!%p1576_p12), 1, %s1398_s22  }
  0x46   : > { %s846_s9 = sshll.u32 (!%p1576_p12), %s273_s29, 5  ;;  %s274_s4 = scalar_lea.sflag (!%p1576_p12), [#allocation3], %s273_s29 }
  0x47   : > { %s1663_s24 = scalar_lea.vmem (!%p1576_p12), [#allocation2], %s846_s9 }
  0x4a   : > { %1349 = dma.done.wait (%p1611_p9), %s274_s4, 512  }
  0x4b   : > { %1351 = vsyncadd (%p1611_p9), %s274_s4, 4294966784  ;;  %s283_s0 = sand.u32 1, %s1600_s11   ;;  %s285_s20 = sand.u32 1, %s1386_s19  }
  0x4c   : > { %s847_s23 = sshll.u32 %s285_s20, 7  ;;  %s284_s12 = scalar_lea.sflag [#allocation6], %s283_s0 }
  0x4d   : > { %s1671_s7 = scalar_lea.vmem [#allocation5], %s847_s23 }
  0x4e   : > { %1353 = dma.done.wait (%p1618_p10), %s284_s12, 2048  }
  0x4f   : > { %1355 = vsyncadd (%p1618_p10), %s284_s12, 4294965248  ;;  %s1678_s30 = sand.u32 1, %s1374_s16  }
  0x50   : > { %s296_s1 = scalar_lea.vmem [#allocation7], %s1678_s30 }
  0x51   : > { %1357 = dma.done.wait (%p1634_p3), %s284_s12, 16  }
  0x52   : > { %1359 = vsyncadd (%p1634_p3), %s284_s12, 4294967280  ;;  %s303_s11 = scalar_lea.sflag [#allocation9], %s1678_s30  ;;  %s305_s26 = scalar_lea.vmem [#allocation8], %s1678_s30 }
  0x53   : > { %1361 = dma.done.wait (%p1634_p3), %s303_s11, 16  }
  0x54   : > { %1363 = vsyncadd (%p1634_p3), %s303_s11, 4294967280  ;;  %s848_s10 = sshll.u32 %s1678_s30, 5  ;;  %s1912_s6 = sld [smem:[#allocation18_spill]] }
  0x55   : > { %s1692_s21 = scalar_lea.vmem [#allocation10], %s848_s10 }
  0x5a   : > { %p849_p7 = scmp.ne.s32.totalorder %s1912_s6, 0 }
  0x5c   : > { %350 = sbr.rel (%p849_p7) target bundleno = 102 (0x66), region = 56 }
  0x61   : > { %v1427_v0 = vmov 0.0  }
  0x62   : > { %351 = vst [vmem:[%s1692_s21] sm:$0xff] %v1427_v0 }
  0x63   : > { %352 = vst [vmem:[%s1692_s21 + $0x8] sm:$0xff] %v1427_v0 }
  0x64   : > { %353 = vst [vmem:[%s1692_s21 + $0x10] sm:$0xff] %v1427_v0 }
  0x65   : > { %354 = vst [vmem:[%s1692_s21 + $0x18] sm:$0xff] %v1427_v0 }
  0x66 PF: > { %v924_v1 = vld [vmem:[%s1671_s7 + $0x70] sm:$0xf]  ;;  %v959_v2 = vld [vmem:[%s1671_s7 + $0x74] sm:$0xf0]  ;;  %v958_v3 = vld [vmem:[%s1671_s7 + $0x74] sm:$0xf] }
  0x67   : > { %v925_v4 = vor.u32 %v959_v2, %v924_v1  ;;  %v926_v5 = vld [vmem:[%s1671_s7 + $0x78] sm:$0xf0]  ;;  %v916_v7 = vld [vmem:[%s1671_s7 + $0x60] sm:$0xf]  ;;  %v957_v8 = vld [vmem:[%s1671_s7 + $0x64] sm:$0xf0] }
  0x68   : > { %v929_v6 = vor.u32 %v958_v3, %v926_v5  ;;  %v956_v9 = vld [vmem:[%s1671_s7 + $0x64] sm:$0xf]  ;;  %v918_v10 = vld [vmem:[%s1671_s7 + $0x68] sm:$0xf0]  ;;  %v917_v11 = vor.u32 %v957_v8, %v916_v7  ;;  %v908_v13 = vld [vmem:[%s1671_s7 + $0x50] sm:$0xf] }
  0x69   : > { %479 = vmatpush.bf16.xpose.msra.mxu0 %v925_v4  ;;  %960 = vmatpush.bf16.xpose.msra.mxu2 %v925_v4  ;;  %v921_v12 = vor.u32 %v956_v9, %v918_v10  ;;  %v955_v14 = vld [vmem:[%s1671_s7 + $0x54] sm:$0xf0]  ;;  %v954_v15 = vld [vmem:[%s1671_s7 + $0x54] sm:$0xf]  ;;  %v910_v16 = vld [vmem:[%s1671_s7 + $0x58] sm:$0xf0] }
  0x6a   : > { %498 = vmatpush.bf16.xpose.msra.mxu1 %v929_v6  ;;  %968 = vmatpush.bf16.xpose.msra.mxu3 %v929_v6  ;;  %v909_v17 = vor.u32 %v955_v14, %v908_v13  ;;  %v913_v18 = vor.u32 %v954_v15, %v910_v16  ;;  %v900_v19 = vld [vmem:[%s1671_s7 + $0x40] sm:$0xf]  ;;  %v953_v20 = vld [vmem:[%s1671_s7 + $0x44] sm:$0xf0]  ;;  %v952_v21 = vld [vmem:[%s1671_s7 + $0x44] sm:$0xf] }
  0x6b   : > { %v902_v22 = vld [vmem:[%s1671_s7 + $0x48] sm:$0xf0]  ;;  %v901_v23 = vor.u32 %v953_v20, %v900_v19  ;;  %v892_v25 = vld [vmem:[%s1671_s7 + $0x30] sm:$0xf]  ;;  %v951_v26 = vld [vmem:[%s1671_s7 + $0x34] sm:$0xf0] }
  0x6c   : > { %v905_v24 = vor.u32 %v952_v21, %v902_v22  ;;  %v950_v27 = vld [vmem:[%s1671_s7 + $0x34] sm:$0xf]  ;;  %v894_v28 = vld [vmem:[%s1671_s7 + $0x38] sm:$0xf0]  ;;  %v893_v29 = vor.u32 %v951_v26, %v892_v25  ;;  %v884_v31 = vld [vmem:[%s1671_s7 + $0x20] sm:$0xf] }
  0x6d   : > { %v897_v30 = vor.u32 %v950_v27, %v894_v28  ;;  %v949_v32 = vld [vmem:[%s1671_s7 + $0x24] sm:$0xf0]  ;;  %v948_v33 = vld [vmem:[%s1671_s7 + $0x24] sm:$0xf]  ;;  %v886_v34 = vld [vmem:[%s1671_s7 + $0x28] sm:$0xf0] }
  0x6e   : > { %v885_v35 = vor.u32 %v949_v32, %v884_v31  ;;  %v889_v36 = vor.u32 %v948_v33, %v886_v34  ;;  %v876_v37 = vld [vmem:[%s1671_s7 + $0x10] sm:$0xf]  ;;  %v947_v38 = vld [vmem:[%s1671_s7 + $0x14] sm:$0xf0]  ;;  %v946_v39 = vld [vmem:[%s1671_s7 + $0x14] sm:$0xf] }
  0x6f   : > { %v878_v40 = vld [vmem:[%s1671_s7 + $0x18] sm:$0xf0]  ;;  %v877_v41 = vor.u32 %v947_v38, %v876_v37  ;;  %v868_v43 = vld [vmem:[%s1671_s7] sm:$0xf]  ;;  %v945_v44 = vld [vmem:[%s1671_s7 + $0x4] sm:$0xf0] }
  0x70   : > { %v881_v42 = vor.u32 %v946_v39, %v878_v40  ;;  %v944_v45 = vld [vmem:[%s1671_s7 + $0x4] sm:$0xf]  ;;  %v870_v46 = vld [vmem:[%s1671_s7 + $0x8] sm:$0xf0]  ;;  %v869_v47 = vor.u32 %v945_v44, %v868_v43  ;;  %v852_v49 = vld [vmem:[%s1663_s24] sm:$0xf] }
  0x71   : > { %480 = vmatpush.bf16.xpose.msra.mxu0 %v917_v11  ;;  %961 = vmatpush.bf16.xpose.msra.mxu2 %v917_v11  ;;  %v873_v48 = vor.u32 %v944_v45, %v870_v46  ;;  %v941_v50 = vld [vmem:[%s1663_s24 + $0x4] sm:$0xf0]  ;;  %v860_v51 = vld [vmem:[%s1663_s24 + $0x10] sm:$0xf]  ;;  %v943_v52 = vld [vmem:[%s1663_s24 + $0x14] sm:$0xf0] }
  0x72   : > { %499 = vmatpush.bf16.xpose.msra.mxu1 %v921_v12  ;;  %969 = vmatpush.bf16.xpose.msra.mxu3 %v921_v12  ;;  %v940_v53 = vld [vmem:[%s1663_s24 + $0x4] sm:$0xf]  ;;  %v854_v54 = vld [vmem:[%s1663_s24 + $0x8] sm:$0xf0]  ;;  %v942_v55 = vld [vmem:[%s1663_s24 + $0x14] sm:$0xf]  ;;  %v853_v57 = vor.u32 %v941_v50, %v852_v49  ;;  %v861_v58 = vor.u32 %v943_v52, %v860_v51 }
  0x73   : > { %v862_v56 = vld [vmem:[%s1663_s24 + $0x18] sm:$0xf0]  ;;  %v857_v59 = vor.u32 %v940_v53, %v854_v54  ;;  %v355_v62 = vld [vmem:[%s1692_s21] sm:$0xff]  ;;  %v357_v3 = vld [vmem:[%s1692_s21 + $0x10] sm:$0xff]  ;;  %s1913_s18 = sld [smem:[#allocation18_spill]] }
  0x74   : > { %v865_v60 = vor.u32 %v942_v55, %v862_v56  ;;  %v356_v7 = vld [vmem:[%s1692_s21 + $0x8] sm:$0xff]  ;;  %v358_v13 = vld [vmem:[%s1692_s21 + $0x18] sm:$0xff] }
  0x79   : > { %481 = vmatpush.bf16.xpose.msra.mxu0 %v909_v17  ;;  %962 = vmatpush.bf16.xpose.msra.mxu2 %v909_v17  ;;  %p930_p12 = scmp.ne.s32.totalorder %s1913_s18, 2 }
  0x7a   : > { %500 = vmatpush.bf16.xpose.msra.mxu1 %v913_v18  ;;  %970 = vmatpush.bf16.xpose.msra.mxu3 %v913_v18 }
  0x81   : > { %482 = vmatpush.bf16.xpose.msra.mxu0 %v901_v23  ;;  %963 = vmatpush.bf16.xpose.msra.mxu2 %v901_v23 }
  0x82   : > { %501 = vmatpush.bf16.xpose.msra.mxu1 %v905_v24  ;;  %971 = vmatpush.bf16.xpose.msra.mxu3 %v905_v24 }
  0x89   : > { %483 = vmatpush.bf16.xpose.msra.mxu0 %v893_v29  ;;  %964 = vmatpush.bf16.xpose.msra.mxu2 %v893_v29 }
  0x8a   : > { %502 = vmatpush.bf16.xpose.msra.mxu1 %v897_v30  ;;  %972 = vmatpush.bf16.xpose.msra.mxu3 %v897_v30 }
  0x91   : > { %484 = vmatpush.bf16.xpose.msra.mxu0 %v885_v35  ;;  %965 = vmatpush.bf16.xpose.msra.mxu2 %v885_v35 }
  0x92   : > { %503 = vmatpush.bf16.xpose.msra.mxu1 %v889_v36  ;;  %973 = vmatpush.bf16.xpose.msra.mxu3 %v889_v36 }
  0x99   : > { %485 = vmatpush.bf16.xpose.msra.mxu0 %v877_v41  ;;  %966 = vmatpush.bf16.xpose.msra.mxu2 %v877_v41 }
  0x9a   : > { %504 = vmatpush.bf16.xpose.msra.mxu1 %v881_v42  ;;  %974 = vmatpush.bf16.xpose.msra.mxu3 %v881_v42 }
  0xa1   : > { %486 = vmatpush.bf16.xpose.msra.mxu0 %v869_v47  ;;  %967 = vmatpush.bf16.xpose.msra.mxu2 %v869_v47 }
  0xa2   : > { %505 = vmatpush.bf16.xpose.msra.mxu1 %v873_v48  ;;  %975 = vmatpush.bf16.xpose.msra.mxu3 %v873_v48 }
  0xa8   : > { %487 = vmatmul.bf16.vlgmr.msra.gmra.mxu0 %v853_v57  ;;  %492 = vmatmul.bf16.vlgmr.msra.gmra.mxu2 %v861_v58 }
  0xa9   : > { %506 = vmatmul.bf16.vlgmr.msra.gmra.mxu1 %v857_v59  ;;  %511 = vmatmul.bf16.vlgmr.msra.gmra.mxu3 %v865_v60 }
 0x125   : > { %v488_v61 = vpop.f32.mrf.mxu0 }
 0x126   : > { %v507_v63 = vpop.f32.mrf.mxu1 }
 0x127   : > { %v508_v0 = vadd.f32 %v507_v63, %v488_v61 }
 0x129   : > { %v517_v1 = vadd.f32 %v508_v0, %v355_v62 }
 0x12b   : > { %521 = vst [vmem:[%s1692_s21] sm:$0xff] %v517_v1  ;;  %v493_v2 = vpop.f32.mrf.mxu2 }
 0x12c   : > { %v512_v4 = vpop.f32.mrf.mxu3 }
 0x12d   : > { %v513_v5 = vadd.f32 %v512_v4, %v493_v2  ;;  %v490_v6 = vpop.f32.mrf.mxu0 }
 0x12e   : > { %v509_v8 = vpop.f32.mrf.mxu1 }
 0x12f   : > { %v519_v9 = vadd.f32 %v513_v5, %v357_v3  ;;  %v510_v10 = vadd.f32 %v509_v8, %v490_v6 }
 0x131   : > { %523 = vst [vmem:[%s1692_s21 + $0x10] sm:$0xff] %v519_v9  ;;  %v518_v11 = vadd.f32 %v510_v10, %v356_v7 }
 0x133   : > { %522 = vst [vmem:[%s1692_s21 + $0x8] sm:$0xff] %v518_v11  ;;  %v495_v12 = vpop.f32.mrf.mxu2 }
 0x134   : > { %v514_v14 = vpop.f32.mrf.mxu3 }
 0x135   : > { %v515_v15 = vadd.f32 %v514_v14, %v495_v12  ;;  %528 = sbr.rel (%p930_p12) target bundleno = 423 (0x1a7), region = 60 }
 0x137   : > { %v520_v16 = vadd.f32 %v515_v15, %v358_v13 }
 0x139   : > { %524 = vst [vmem:[%s1692_s21 + $0x18] sm:$0xff] %v520_v16 }
 0x13a   : > { %v529_v17 = vld [vmem:[%s1692_s21] sm:$0xff]  ;;  %v530_v18 = vld [vmem:[%s1692_s21 + $0x8] sm:$0xff]  ;;  %v531_v19 = vld [vmem:[%s1692_s21 + $0x10] sm:$0xff] }
 0x13b   : > { %v533_v20 = vadd.f32 %v530_v18, %v529_v17  ;;  %v561_v55 = vld [vmem:[%s296_s1] sm:$0x1] }
 0x13c   : > { %v1125_v60 = vld [vmem:[%s305_s26] ss:$0 sm:$0xff] }
 0x13d   : > { %v534_v22 = vadd.f32 %v533_v20, %v531_v19 }
 0x140   : > { %v532_v21 = vld [vmem:[%s1692_s21 + $0x18] sm:$0xff] }
 0x141   : > { %v535_v23 = vadd.f32 %v534_v22, %v532_v21 }
 0x143   : > { %v536_v24 = vrot.slane %v535_v23, 4 }
 0x145   : > { %v537_v25 = vadd.f32 %v536_v24, %v535_v23 }
 0x147   : > { %v538_v26 = vrot.slane %v537_v25, 2 }
 0x149   : > { %v539_v27 = vadd.f32 %v538_v26, %v537_v25 }
 0x14b   : > { %v540_v28 = vrot.slane %v539_v27, 1 }
 0x14d   : > { %v541_v29 = vadd.f32 %v540_v28, %v539_v27 }
 0x14f   : > { %v542_v30 = vmul.f32 0.03125, %v541_v29 }
 0x151   : > { %v543_v31 = vsub.f32 %v529_v17, %v542_v30  ;;  %v544_v32 = vsub.f32 %v530_v18, %v542_v30  ;;  %v545_v33 = vsub.f32 %v531_v19, %v542_v30  ;;  %v546_v34 = vsub.f32 %v532_v21, %v542_v30 }
 0x153   : > { %v547_v35 = vmul.f32 %v543_v31, %v543_v31  ;;  %v548_v36 = vmul.f32 %v544_v32, %v544_v32  ;;  %v549_v37 = vmul.f32 %v545_v33, %v545_v33  ;;  %v550_v38 = vmul.f32 %v546_v34, %v546_v34 }
 0x155   : > { %v551_v39 = vadd.f32 %v548_v36, %v547_v35 }
 0x157   : > { %v552_v40 = vadd.f32 %v551_v39, %v549_v37 }
 0x159   : > { %v553_v41 = vadd.f32 %v552_v40, %v550_v38 }
 0x15b   : > { %v554_v42 = vrot.slane %v553_v41, 4 }
 0x15d   : > { %v555_v43 = vadd.f32 %v554_v42, %v553_v41 }
 0x15f   : > { %v556_v44 = vrot.slane %v555_v43, 2 }
 0x161   : > { %v557_v45 = vadd.f32 %v556_v44, %v555_v43 }
 0x163   : > { %v558_v46 = vrot.slane %v557_v45, 1 }
 0x165   : > { %v559_v47 = vadd.f32 %v558_v46, %v557_v45 }
 0x167   : > { %v560_v48 = vmul.f32 0.03125, %v559_v47 }
 0x169   : > { %v562_v49 = vadd.f32 1e-05, %v560_v48 }
 0x16b   : > { %1126 = vrsqrt.f32 %v562_v49  ;;  %vm569_vm0 = vweird.f32 %v562_v49 }
 0x171   : > { %v1127_v50 = vpop.eup %1126 }
 0x172   : > { %v564_v51 = vmul.f32 %v1127_v50, %v562_v49  ;;  %vm570_vm1 = vweird.f32 %v1127_v50 }
 0x173   : > { %vm571_vm2 = vmor %vm569_vm0, %vm570_vm1 }
 0x174   : > { %v565_v52 = vmul.f32 %v1127_v50, %v564_v51 }
 0x176   : > { %v566_v53 = vmul.f32 0.5, %v565_v52 }
 0x178   : > { %v567_v54 = vsub.f32 1.5, %v566_v53 }
 0x17a   : > { %v568_v56 = vmul.f32 %v1127_v50, %v567_v54 }
 0x17c   : > { %v572_v57 = vsel %vm571_vm2, %v1127_v50, %v568_v56 }
 0x17d   : > { %v573_v58 = vmul.f32 %v572_v57, %v561_v55 }
 0x17f   : > { %v575_v59 = vperm.slane %v573_v58, 0 }
 0x181   : > { %v577_v61 = vmul.f32 %v575_v59, %v543_v31  ;;  %v578_v62 = vmul.f32 %v575_v59, %v544_v32  ;;  %v579_v63 = vmul.f32 %v575_v59, %v545_v33  ;;  %v580_v0 = vmul.f32 %v575_v59, %v546_v34 }
 0x183   : > { %v1756_v1 = vadd.f32 %v1125_v60, %v577_v61  ;;  %v1758_v2 = vadd.f32 %v1125_v60, %v578_v62  ;;  %v1760_v3 = vadd.f32 %v1125_v60, %v579_v63  ;;  %v1762_v4 = vadd.f32 %v1125_v60, %v580_v0 }
 0x185   : > { %v931_v5 = vmul.f32 -1.442695, %v1756_v1  ;;  %v932_v6 = vmul.f32 -1.442695, %v1758_v2  ;;  %v933_v7 = vmul.f32 -1.442695, %v1760_v3 }
 0x186   : > { %v934_v8 = vmul.f32 -1.442695, %v1762_v4 }
 0x187   : > { %1128 = vpow2.f32 %v931_v5 }
 0x188   : > { %1130 = vpow2.f32 %v932_v6 }
 0x189   : > { %1132 = vpow2.f32 %v933_v7 }
 0x18a   : > { %1134 = vpow2.f32 %v934_v8 }
 0x18d   : > { %v1129_v9 = vpop.eup %1128 }
 0x18e   : > { %v1131_v10 = vpop.eup %1130  ;;  %v601_v11 = vadd.f32 1.0, %v1129_v9 }
 0x18f   : > { %v1133_v12 = vpop.eup %1132  ;;  %v602_v13 = vadd.f32 1.0, %v1131_v10 }
 0x190   : > { %v1135_v14 = vpop.eup %1134  ;;  %1136 = vrcp.f32 %v601_v11  ;;  %v603_v15 = vadd.f32 1.0, %v1133_v12  ;;  %v614_v17 = vand.u32 2147483647, %v601_v11  ;;  %v616_v18 = vand.u32 2147483648, %v601_v11 }
 0x191   : > { %1138 = vrcp.f32 %v602_v13  ;;  %v604_v16 = vadd.f32 1.0, %v1135_v14  ;;  %v629_v20 = vand.u32 2147483647, %v602_v13  ;;  %v631_v21 = vand.u32 2147483648, %v602_v13 }
 0x192   : > { %1140 = vrcp.f32 %v603_v15  ;;  %vm610_vm3 = vweird.f32 %v601_v11  ;;  %vm625_vm4 = vweird.f32 %v602_v13  ;;  %vm1768_vm6 = vcmp.eq.f32.partialorder %v614_v17, 8.507059e+37 }
 0x193   : > { %1142 = vrcp.f32 %v604_v16  ;;  %v617_v27 = vor.u32 1.1754944e-38, %v616_v18  ;;  %vm1772_vm8 = vcmp.eq.f32.partialorder %v629_v20, 8.507059e+37  ;;  %v632_v31 = vor.u32 1.1754944e-38, %v631_v21 }
 0x194   : > { %vm640_vm9 = vweird.f32 %v603_v15  ;;  %v644_v35 = vand.u32 2147483647, %v603_v15  ;;  %v646_v38 = vand.u32 2147483648, %v603_v15  ;;  %vm655_vm11 = vweird.f32 %v604_v16 }
 0x195   : > { %v661_v43 = vand.u32 2147483648, %v604_v16  ;;  %v659_v46 = vand.u32 2147483647, %v604_v16 }
 0x196   : > { %v1137_v19 = vpop.eup %1136  ;;  %vm1788_vm15 = vcmp.eq.f32.partialorder %v644_v35, 8.507059e+37  ;;  %v647_v52 = vor.u32 1.1754944e-38, %v646_v38 }
 0x197   : > { %v1139_v22 = vpop.eup %1138  ;;  %v606_v23 = vmul.f32 %v1137_v19, %v601_v11  ;;  %vm611_vm5 = vweird.f32 %v1137_v19  ;;  %v662_v57 = vor.u32 1.1754944e-38, %v661_v43  ;;  %vm660_vm2 = vcmp.eq.f32.partialorder %v659_v46, 8.507059e+37 }
 0x198   : > { %v621_v24 = vmul.f32 %v1139_v22, %v602_v13  ;;  %v1141_v28 = vpop.eup %1140  ;;  %vm626_vm7 = vweird.f32 %v1139_v22  ;;  %vm1777_vm10 = vmor %vm610_vm3, %vm611_vm5 }
 0x199   : > { %v607_v25 = vsub.f32 1.0, %v606_v23  ;;  %v1143_v32 = vpop.eup %1142  ;;  %v636_v34 = vmul.f32 %v1141_v28, %v603_v15  ;;  %vm1782_vm12 = vmor %vm625_vm4, %vm626_vm7  ;;  %vm641_vm13 = vweird.f32 %v1141_v28 }
 0x19a   : > { %v622_v29 = vsub.f32 1.0, %v621_v24  ;;  %v651_v39 = vmul.f32 %v1143_v32, %v604_v16  ;;  %vm656_vm14 = vweird.f32 %v1143_v32  ;;  %vm642_vm0 = vmor %vm640_vm9, %vm641_vm13 }
 0x19b   : > { %v608_v33 = vmul.f32 %v1137_v19, %v607_v25  ;;  %v637_v42 = vsub.f32 1.0, %v636_v34  ;;  %vm657_vm1 = vmor %vm655_vm11, %vm656_vm14 }
 0x19c   : > { %v623_v37 = vmul.f32 %v1139_v22, %v622_v29  ;;  %v652_v45 = vsub.f32 1.0, %v651_v39 }
 0x19d   : > { %v609_v40 = vadd.f32 %v1137_v19, %v608_v33  ;;  %v638_v48 = vmul.f32 %v1141_v28, %v637_v42 }
 0x19e   : > { %v624_v44 = vadd.f32 %v1139_v22, %v623_v37  ;;  %v653_v53 = vmul.f32 %v1143_v32, %v652_v45 }
 0x19f   : > { %v613_v47 = vsel %vm1777_vm10, %v1137_v19, %v609_v40  ;;  %v639_v56 = vadd.f32 %v1141_v28, %v638_v48 }
 0x1a0   : > { %v618_v50 = vsel %vm1768_vm6, %v617_v27, %v613_v47  ;;  %v628_v51 = vsel %vm1782_vm12, %v1139_v22, %v624_v44  ;;  %v654_v59 = vadd.f32 %v1143_v32, %v653_v53 }
 0x1a1   : > { %v665_v54 = vmul.f32 %v618_v50, %v1756_v1  ;;  %v633_v55 = vsel %vm1772_vm8, %v632_v31, %v628_v51  ;;  %v643_v60 = vsel %vm642_vm0, %v1141_v28, %v639_v56 }
 0x1a2   : > { %v666_v58 = vmul.f32 %v633_v55, %v1758_v2  ;;  %v648_v61 = vsel %vm1788_vm15, %v647_v52, %v643_v60  ;;  %v658_v62 = vsel %vm657_vm1, %v1143_v32, %v654_v59 }
 0x1a3   : > { %669 = vst [vmem:[%s1692_s21] sm:$0xff] %v665_v54  ;;  %v667_v63 = vmul.f32 %v648_v61, %v1760_v3  ;;  %v663_v0 = vsel %vm660_vm2, %v662_v57, %v658_v62 }
 0x1a4   : > { %670 = vst [vmem:[%s1692_s21 + $0x8] sm:$0xff] %v666_v58  ;;  %v668_v1 = vmul.f32 %v663_v0, %v1762_v4 }
 0x1a5   : > { %671 = vst [vmem:[%s1692_s21 + $0x10] sm:$0xff] %v667_v63 }
 0x1a6   : > { %672 = vst [vmem:[%s1692_s21 + $0x18] sm:$0xff] %v668_v1 }
 0x1a7 PF: > { %s1924_s5 = sld [smem:[#allocation19_spill]]  ;;  %s685_s24 = sshll.u32 %s1692_s21, 4  ;;  %s686_s24 = int_to_ptr.vmem [resolvable:$true] %s685_s24 }
 0x1a8   : > { %s1925_s9 = sld [smem:[#allocation28_spill]]  ;;  %s674_s20 = scalar_lea.sflag [#allocation4], %s1678_s30 }
 0x1ad   : > { %s936_s25 = sshll.u32 %s1924_s5, 3 }
 0x1ae   : > { %s684_s4 = scalar_lea.hbm %s1925_s9, %s936_s25  ;;  %s1284_s11 = scalar_lea.hbm %s1925_s9, 96 }
 0x1af   : > { %s687_s0 = sshll.u32 %s684_s4, 4  ;;  %s688_s0 = int_to_ptr.hbm [resolvable:$true] %s687_s0 }
 0x1b0   : > { %s1278_s23 = sshra.s32 %s688_s0, 4  ;;  %s1279_s23 = int_to_ptr.hbm [resolvable:$true] %s1278_s23 }
 0x1b1   : > { %s1280_s12 = scalar_lea.hbm %s1279_s23, 32  ;;  %p1285_p10 = scmp.lt.s32.totalorder %s1279_s23, %s1925_s9 }
 0x1b2   : > { %p1281_p4 = scmp.ne.s32.totalorder %s1279_s23, %s1280_s12  ;;  %p1286_p11 = scmp.lt.s32.totalorder %s1284_s11, %s1280_s12 }
 0x1b4   : > { %p1282_p8 = pnand %p1281_p4, %p1639_p6  ;;  %p1287_p13 = por %p1286_p11, %p1285_p10 }
 0x1b6   : > { %p1283_p9 = pneg %p1282_p8 }
 0x1b8   : > { %p1288_p0 = pnand %p1287_p13, %p1283_p9 }
 0x1ba   : > { %1291 = shalt.err (!%p1288_p0)
}
 0x1bb   : > { %s1428_s30 = smov 128   ;;  %s1429_s21 = smov 384  }
 0x1bc   : > { %s1430_s6 = smov 8  }
 0x1bd   : > { %985 = dma.vmem_to_hbm [thread:$0]  (%p1639_p6), %s686_s24, 512, %s688_s0, %s674_s20, %s1428_s30, %s1429_s21, %s1430_s6  }
 0x1be PF: > { %p1005_p2 = scmp.ge.s32.totalorder %s1422_s28, 2  ;;  %s702_s18 = sand.u32 1, %s1370_s15  }
 0x1bf   : > { %s703_s5 = scalar_lea.sflag [#allocation4], %s702_s18 }
 0x1c0   : > { %p1001_p3 = pnand %p1005_p2, %p1643_p5 }
 0x1c2   : > { %p1002_p1 = pneg %p1001_p3 }
 0x1c4   : > { %1365 = dma.done.wait (%p1002_p1), %s703_s5, 512  }
 0x1c5   : > { %1367 = vsyncadd (%p1002_p1), %s703_s5, 4294966784  ;;  %s26_s28 = sadd.s32 1, %s1422_s28   ;;  %s1927_s8 = sld [smem:[#allocation25_spill]] }
 0x1c6   : > { %p1831_p7 = scmp.ge.s32.totalorder %s26_s28, 11   ;;  %s1928_s14 = sld [smem:[#allocation16_spill]] }
 0x1c7   : > { %s1929_s20 = sld [smem:[#allocation23_spill]]  ;;  %s1936_s15 = smov %s1374_s16 }
 0x1c8   : > { %s1930_s29 = sld [smem:[#allocation17_spill]]  ;;  %s1937_s16 = smov %s1378_s17 }
 0x1c9   : > { %s1931_s23 = sld [smem:[#allocation24_spill]]  ;;  %s1939_s18 = smov %s1386_s19 }
 0x1ca   : > { %s1932_s24 = sld [smem:[#allocation20_spill]]  ;;  %s1941_s21 = smov %s1398_s22 }
 0x1cb   : > { %s1933_s26 = sld [smem:[#allocation21_spill]]  ;;  %s1938_s17 = smov %s1927_s8 }
 0x1cc   : > { %s1934_s13 = sld [smem:[#allocation22_spill]]  ;;  %s1940_s19 = smov %s1928_s14 }
 0x1cd   : > { %s1943_s25 = smov %s1418_s27 }
 0x1ce   : > { %s1942_s22 = smov %s1930_s29  ;;  %25 = sbr.rel (!%p1831_p7) target bundleno = 18 (0x12), region = 126 }
 0x1d2   : > { %s1944_s27 = smov %s1934_s13 }
 0x1d3   :  { %709 = vsyncpa [#allocation3], 1 }
 0x1d4   :  { %711 = vsyncpa [#allocation3 + $0x1], 1 }
 0x1d5   :  { %712 = vsyncpa [#allocation6], 1 }
 0x1d6   :  { %714 = vsyncpa [#allocation6 + $0x1], 1 }
 0x1d7   :  { %715 = vsyncpa [#allocation9], 1 }
 0x1d8   :  { %717 = vsyncpa [#allocation9 + $0x1], 1 }
 0x1d9   :  { %718 = vsyncpa [#allocation4], 1 }
 0x1da   :  { %720 = vsyncpa [#allocation4 + $0x1], 1 }

</bundles_post_ra>
